<compile_context>
chip_gen: v6e
topology: v6e:2x2x1
jax: 0.10.0
libtpu: 0.0.40
codegen_flags: <defaults>
</compile_context>

<pallas_src>
import functools
import math

import numpy as np
import jax
import jax.numpy as jnp
from jax.experimental import pallas as pl
from jax.experimental.pallas import tpu as pltpu


# ---------------------------------------------------------------------------
# Activations (jnp equivalents of the torch `_str_to_activation` entries used).
# ---------------------------------------------------------------------------
_ACTS = {
    "relu": lambda x: jnp.maximum(x, 0.0),
    "elu": lambda x: jnp.where(x > 0, x, jnp.exp(jnp.minimum(x, 0.0)) - 1.0),
    "tanh": jnp.tanh,
    "sigmoid": jax.nn.sigmoid,
    "identity": lambda x: x,
}


def _round_up(x, m):
    return ((x + m - 1) // m) * m


def _geom(H, W, K, bfold):
    """Embedded flat-lane geometry of an (H, W) image consumed by a stride-2
    ConvTranspose of kernel size K: row stride S, row count Hh, and per-element
    lane width LWp padded so bfold * LWp is a multiple of 128."""
    halo = (K - 1) // 2          # max tap block offset (dh, dw)
    S = W + halo
    Hh = H + halo                # NV + max_shift == Hh*S exactly -> rolls are safe
    lane_mult = 128 // math.gcd(bfold, 128)
    LWp = _round_up(Hh * S, lane_mult)
    return S, Hh, LWp


# ---------------------------------------------------------------------------
# Runtime probe: does pltpu.roll follow jnp.roll's sign convention on this
# backend?  (Correctness is preserved either way by adjusting the shift.)
# ---------------------------------------------------------------------------
def _roll_probe_kernel(x_ref, o_ref):
    o_ref[...] = pltpu.roll(x_ref[...], 1, axis=1)


def _roll_is_forward():
    x = jnp.arange(8 * 128, dtype=jnp.float32).reshape(8, 128)
    y = pl.pallas_call(
        _roll_probe_kernel,
        out_shape=jax.ShapeDtypeStruct((8, 128), jnp.float32),
    )(x)
    return bool(jnp.array_equal(y, jnp.roll(x, 1, axis=1)))


# ---------------------------------------------------------------------------
# Kernel 1: dense + first ConvTranspose2d (1x1 spatial input) + activation.
# out[b, c*K*K + kh*K + kw] = act( ((feat @ Wd + bd) @ W0)[...] + b0[c] ).
# ---------------------------------------------------------------------------
def _dense_conv0_kernel(f_ref, wd_ref, bd_ref, w0_ref, b0_ref, o_ref, *, act_fn):
    h = jnp.dot(f_ref[0], wd_ref[...], preferred_element_type=jnp.float32)
    h = h + bd_ref[...]
    y = jnp.dot(h.astype(jnp.bfloat16), w0_ref[...],
                preferred_element_type=jnp.float32)
    y = y + b0_ref[...]
    o_ref[0] = act_fn(y).astype(o_ref.dtype)


def dense_conv0_pallas(feat, wd, bd, w0, b0, K, act_fn, G, out_dtype):
    """feat: (Bf, Din).  Returns (G, Bf//G, Cout*K*K) with channel-major columns
    (cout, kh, kw), i.e. a flattened NCHW (Bf, Cout, K, K) image."""
    Bf, Din = feat.shape
    D0 = wd.shape[1]
    Cout = w0.shape[-1]
    cols = Cout * K * K
    bfold = Bf // G

    # (K, K, Cin, Cout) -> (Cin, Cout*K*K), channel-major columns.
    w0p = jnp.transpose(w0, (2, 3, 0, 1)).reshape(D0, cols).astype(jnp.bfloat16)
    b0r = jnp.repeat(b0, K * K).reshape(1, cols).astype(jnp.float32)

    return pl.pallas_call(
        functools.partial(_dense_conv0_kernel, act_fn=act_fn),
        out_shape=jax.ShapeDtypeStruct((G, bfold, cols), out_dtype),
        grid_spec=pltpu.PrefetchScalarGridSpec(
            num_scalar_prefetch=0,
            grid=(G,),
            in_specs=[
                pl.BlockSpec((1, bfold, Din), lambda g: (g, 0, 0)),
                pl.BlockSpec((Din, D0), lambda g: (0, 0)),
                pl.BlockSpec((1, D0), lambda g: (0, 0)),
                pl.BlockSpec((D0, cols), lambda g: (0, 0)),
                pl.BlockSpec((1, cols), lambda g: (0, 0)),
            ],
            out_specs=pl.BlockSpec((1, bfold, cols), lambda g: (g, 0, 0)),
        ),
        compiler_params=pltpu.CompilerParams(
            dimension_semantics=("parallel",)),
    )(feat.reshape(G, bfold, Din).astype(jnp.bfloat16),
      wd.astype(jnp.bfloat16),
      bd.reshape(1, D0).astype(jnp.float32),
      w0p, b0r)


# ---------------------------------------------------------------------------
# Kernel 2: general ConvTranspose2d(stride=2), batch folded on the lane axis.
# One fused bf16 matmul for all K*K taps, then a static pltpu.roll per tap into
# one of 4 stride-2 parity planes kept as full-width f32 values; activation and
# exactly one store per plane.
# ---------------------------------------------------------------------------
def _convt_kernel(x_ref, w_ref, b_ref, o_ref, *, K, S, Cp,
                  apply_act, act_fn, roll_forward):
    wfold = x_ref.shape[-1]
    n_store = o_ref.shape[2]

    # (K*K*Cp, Cin) @ (Cin, bfold*LWp) -> f32
    y = jnp.dot(w_ref[...], x_ref[0], preferred_element_type=jnp.float32)

    # Per-parity accumulators (values), initialized with the bias broadcast.
    bias = jnp.broadcast_to(b_ref[...], (Cp, wfold)).astype(jnp.float32)
    planes = [bias, bias, bias, bias]

    # Tap (kh, kw) -> parity (kh%2, kw%2), constant lane shift (kh//2)*S + kw//2.
    # Roll wraparound (incl. across folded batch blocks) only moves lanes from
    # the all-zero halo region of the embedded input, so full-width adds are safe.
    for kh in range(K):
        ph, dh = kh % 2, kh // 2
        for kw in range(K):
            pw, dw = kw % 2, kw // 2
            p = 2 * ph + pw
            t = kh * K + kw
            shift = dh * S + dw
            tap = y[t * Cp:(t + 1) * Cp, :]
            if shift:
                amt = shift if roll_forward else wfold - shift
                tap = pltpu.roll(tap, amt, axis=1)
            planes[p] = planes[p] + tap

    # Activation (f32) + exactly one lane-dense store per parity plane.
    for p in range(4):
        v = planes[p]
        if apply_act:
            v = act_fn(v)
        o_ref[0, p] = v[:n_store].astype(o_ref.dtype)


def conv_transpose_pallas(xemb, w, b, *, K, S, G, bfold, apply_act, act_fn,
                          out_dtype, roll_forward):
    """ConvTranspose2d(Cin, Cout, K, stride=2) on an embedded, batch-folded
    input xemb: (G, Cin, bfold*LWp) bf16 (image rows at lane stride S, zero halo).

    Returns the 4 stride-2 parity planes (G, 4, Cout, bfold*LWp):
      out[b, c, 2R+ph, 2C+pw] = planes[g, 2*ph+pw, c, (b % bfold)*LWp + R*S + C].
    """
    Cin = xemb.shape[1]
    wfold = xemb.shape[-1]
    Cout = w.shape[-1]
    Cp = max(8, _round_up(Cout, 8))       # pad rows to a sublane multiple

    # (K, K, Cin, Cout) -> (K*K*Cp, Cin): tap-major rows, zero rows for padding.
    wp = jnp.transpose(w, (0, 1, 3, 2))
    wp = jnp.pad(wp, ((0, 0), (0, 0), (0, Cp - Cout), (0, 0)))
    wp = wp.reshape(K * K * Cp, Cin).astype(jnp.bfloat16)
    bp = jnp.pad(b, (0, Cp - Cout)).reshape(Cp, 1).astype(jnp.float32)

    kern = functools.partial(_convt_kernel, K=K, S=S, Cp=Cp,
                             apply_act=apply_act, act_fn=act_fn,
                             roll_forward=roll_forward)
    return pl.pallas_call(
        kern,
        out_shape=jax.ShapeDtypeStruct((G, 4, Cout, wfold), out_dtype),
        grid_spec=pltpu.PrefetchScalarGridSpec(
            num_scalar_prefetch=0,
            grid=(G,),
            in_specs=[
                pl.BlockSpec((1, Cin, wfold), lambda g: (g, 0, 0)),
                pl.BlockSpec((K * K * Cp, Cin), lambda g: (0, 0)),
                pl.BlockSpec((Cp, 1), lambda g: (0, 0)),
            ],
            out_specs=pl.BlockSpec((1, 4, Cout, wfold), lambda g: (g, 0, 0, 0)),
        ),
        compiler_params=pltpu.CompilerParams(
            dimension_semantics=("parallel",)),
    )(xemb, wp, bp)


# ---------------------------------------------------------------------------
# XLA glue between layers (tiny tensors): parity de-interleave and embedding.
# ---------------------------------------------------------------------------
def _embed_image(img, *, Hh, S, LWp):
    """(G, C, bfold, H, W) -> (G, C, bfold*LWp) flat-lane embedding, zero halo."""
    G, C, bfold, H, W = img.shape
    emb = jnp.pad(img, ((0, 0), (0, 0), (0, 0), (0, Hh - H), (0, S - W)))
    emb = emb.reshape(G, C, bfold, Hh * S)
    if LWp > Hh * S:
        emb = jnp.pad(emb, ((0, 0), (0, 0), (0, 0), (0, LWp - Hh * S)))
    return emb.reshape(G, C, bfold * LWp)


def _planes_to_image(acc, *, Cout, bfold, Hh, S, Hout, Wout, channel_major):
    """De-interleave the 4 stride-2 parity planes into the spatial image."""
    G = acc.shape[0]
    LWp = acc.shape[-1] // bfold
    a = acc.reshape(G, 2, 2, Cout, bfold, LWp)[..., :Hh * S]
    a = a.reshape(G, 2, 2, Cout, bfold, Hh, S)    # (G, ph, pw, C, b, R, C2)
    if channel_major:
        a = jnp.transpose(a, (0, 3, 4, 5, 1, 6, 2))      # (G, C, b, R, ph, C2, pw)
        a = a.reshape(G, Cout, bfold, 2 * Hh, 2 * S)
        return a[:, :, :, :Hout, :Wout]
    a = jnp.transpose(a, (0, 4, 3, 5, 1, 6, 2))          # (G, b, C, R, ph, C2, pw)
    a = a.reshape(G, bfold, Cout, 2 * Hh, 2 * S)
    return a[:, :, :, :Hout, :Wout]


# ---------------------------------------------------------------------------
# ConvDecoder forward (discrete=False branch), returning the Normal mean.
# ---------------------------------------------------------------------------
def conv_decoder_forward(features, params, output_shape, kernels, act_name,
                         roll_forward=True):
    act_fn = _ACTS[act_name]
    batch_shape = features.shape[:-1]
    Bf = int(np.prod(batch_shape))
    n = len(kernels)
    G = 2 if (Bf % 2 == 0 and Bf >= 2) else 1   # >=2 grid steps for v7x megacore
    bfold = Bf // G

    feat = features.reshape(Bf, features.shape[-1])
    w0, b0 = params["convs"][0]
    K0 = kernels[0]
    C1 = w0.shape[-1]
    first_act = act_fn if n > 1 else _ACTS["identity"]
    y0 = dense_conv0_pallas(feat, params["dense_w"], params["dense_b"],
                            w0, b0, K0, first_act, G,
                            jnp.bfloat16 if n > 1 else jnp.float32)

    # (G, bfold, C1*K0*K0) channel-major -> image (G, C1, bfold, K0, K0)
    img = jnp.transpose(y0.reshape(G, bfold, C1, K0, K0), (0, 2, 1, 3, 4))
    if n == 1:
        out = jnp.transpose(img, (0, 2, 1, 3, 4)).reshape(Bf, C1, K0, K0)
        return out.astype(jnp.float32).reshape(*batch_shape, *output_shape)

    H, W = K0, K0
    S, Hh, LWp = _geom(H, W, kernels[1], bfold)
    x = _embed_image(img, Hh=Hh, S=S, LWp=LWp)      # (G, C1, bfold*LWp) bf16

    for i in range(1, n):
        K = kernels[i]
        w, b = params["convs"][i]
        Cout = w.shape[-1]
        last = (i == n - 1)
        acc = conv_transpose_pallas(
            x, w, b, K=K, S=S, G=G, bfold=bfold,
            apply_act=not last, act_fn=act_fn,
            out_dtype=jnp.float32 if last else jnp.bfloat16,
            roll_forward=roll_forward)
        Hout, Wout = 2 * (H - 1) + K, 2 * (W - 1) + K
        if last:
            img = _planes_to_image(acc, Cout=Cout, bfold=bfold, Hh=Hh, S=S,
                                   Hout=Hout, Wout=Wout, channel_major=False)
            break
        S_n, Hh_n, LWp_n = _geom(Hout, Wout, kernels[i + 1], bfold)
        img = _planes_to_image(acc, Cout=Cout, bfold=bfold, Hh=Hh, S=S,
                               Hout=Hout, Wout=Wout, channel_major=True)
        x = _embed_image(img, Hh=Hh_n, S=S_n, LWp=LWp_n)
        H, W, S, Hh = Hout, Wout, S_n, Hh_n

    mean = img.reshape(Bf, Cout, Hout, Wout)
    return mean.reshape(*batch_shape, *output_shape)


# ---------------------------------------------------------------------------
# Pure-JAX reference (XLA convs, f32 HIGHEST precision) for the correctness check.
# ---------------------------------------------------------------------------
def ref_forward(features, params, output_shape, kernels, act_name):
    act_fn = _ACTS[act_name]
    batch_shape = features.shape[:-1]
    bf = int(np.prod(batch_shape))
    n = len(kernels)

    x = features.reshape(bf, features.shape[-1])
    x = jnp.dot(x, params["dense_w"],
                precision=jax.lax.Precision.HIGHEST) + params["dense_b"]
    x = x.reshape(bf, 1, 1, -1)
    for i, (K, (w, b)) in enumerate(zip(kernels, params["convs"])):
        wf = w[::-1, ::-1, :, :]                              # spatial flip
        x = jax.lax.conv_general_dilated(
            x, wf, window_strides=(1, 1),
            padding=[(K - 1, K - 1), (K - 1, K - 1)],
            lhs_dilation=(2, 2),
            dimension_numbers=("NHWC", "HWIO", "NHWC"),
            precision=jax.lax.Precision.HIGHEST) + b
        if i != n - 1:
            x = act_fn(x)
    return jnp.transpose(x, (0, 3, 1, 2)).reshape(*batch_shape, *output_shape)


# ---------------------------------------------------------------------------
# Deterministic parameter init (shapes from ConvDecoder.__init__; conv weights
# generated directly in HWIO layout instead of PyTorch's (Cin, Cout, kH, kW)).
# ---------------------------------------------------------------------------
def init_params(key, in_dim, depth, output_shape, kernels):
    n = len(kernels)
    keys = jax.random.split(key, 2 + 2 * n)
    d_out = 32 * depth
    params = {
        "dense_w": jax.random.uniform(keys[0], (in_dim, d_out), jnp.float32,
                                      -1.0, 1.0) / np.sqrt(in_dim),
        "dense_b": jax.random.uniform(keys[1], (d_out,), jnp.float32,
                                      -1.0, 1.0) * 0.1,
        "convs": [],
    }
    for i, K in enumerate(kernels):
        cin = 32 * depth if i == 0 else depth * 2 ** (n - 1 - i)
        cout = output_shape[0] if i == n - 1 else depth * 2 ** (n - 2 - i)
        w = jax.random.uniform(keys[2 + 2 * i], (K, K, cin, cout), jnp.float32,
                               -1.0, 1.0) / np.sqrt(cin)
        bb = jax.random.uniform(keys[3 + 2 * i], (cout,), jnp.float32,
                                -1.0, 1.0) * 0.1
        params["convs"].append((w, bb))
    return params


# ---------------------------------------------------------------------------
if __name__ == "__main__":
    stoch_size, deter_size, depth = 8, 24, 8        # small synthetic config
    kernels = (5, 5, 6, 6)                          # spatial: 1 -> 5 -> 13 -> 30 -> 64
    output_shape = (3, 64, 64)
    activation = "elu"
    batch_shape = (2, 4)

    root = jax.random.PRNGKey(0)
    k_feat, k_par = jax.random.split(root)
    features = jax.random.normal(
        k_feat, batch_shape + (stoch_size + deter_size,), jnp.float32)
    params = init_params(k_par, stoch_size + deter_size, depth, output_shape,
                         kernels)

    roll_forward = _roll_is_forward()               # pin pltpu.roll sign convention

    fwd = jax.jit(functools.partial(conv_decoder_forward,
                                    output_shape=output_shape,
                                    kernels=kernels,
                                    act_name=activation,
                                    roll_forward=roll_forward))
    mean = jax.block_until_ready(fwd(features, params))
    assert mean.shape == batch_shape + output_shape, mean.shape

    ref_mean = jax.block_until_ready(
        ref_forward(features, params, output_shape, kernels, activation))
    # bf16 matmul operands (f32 accumulation) -> loosened tolerances vs f32 ref
    np.testing.assert_allclose(np.asarray(mean), np.asarray(ref_mean),
                               rtol=5e-2, atol=3e-2)

    print("KERNEL_OK")
</pallas_src>

<mosaic_0001>
module attributes {stable_mosaic.version = 11 : i64} {
  func.func @_roll_probe_kernel(%arg0: memref<8x128xf32, #tpu.memory_space<vmem>>, %arg1: memref<8x128xf32, #tpu.memory_space<vmem>>) attributes {dimension_semantics = [], scalar_prefetch = 0 : i64, scratch_operands = 0 : i64, tpu.core_type = #tpu.core_type<tc>} {
    %c0 = arith.constant 0 : index
    %c0_0 = arith.constant 0 : index
    %0 = vector.load %arg0[%c0, %c0_0] : memref<8x128xf32, #tpu.memory_space<vmem>>, vector<8x128xf32>
    %c1_i32 = arith.constant 1 : i32
    %1 = tpu.dynamic_rotate %0 by %c1_i32 dim 1 : vector<8x128xf32>, i32 -> vector<8x128xf32>
    %c0_1 = arith.constant 0 : index
    %c0_2 = arith.constant 0 : index
    %2 = vector.load %arg1[%c0_1, %c0_2] : memref<8x128xf32, #tpu.memory_space<vmem>>, vector<8x128xf32>
    tpu.vector_store %arg1[%c0_1, %c0_2], %1 {strides = array<i32>} : memref<8x128xf32, #tpu.memory_space<vmem>>, vector<8x128xf32>,
    return
  }
}

</mosaic_0001>

<bundles_post_ra>
// kernel: tpu_custom_call.1
= control target key start
LH: loop header
LB: loop body
LE: loop exit
PB: predicated region body
PF: predicated region fallthrough
CT: control target
= control target key end

     0   :  { %6 = vsyncpa [#allocation3], 0  ;;  %s106_s0 = inlined_call_operand.hbm [shape: f32[8,128], index: 0, kind: input, shape index: {}]   ;;  %s107_s1 = inlined_call_operand.hbm [shape: f32[8,128], index: 1, kind: output, shape index: {}]  }
   0x1   :  { %7 = vsyncpa [#allocation4], 0  ;;  %s87_s6 = smov [#allocation2]  }
   0x2   :  { %s14_s7 = sshll.u32 %s87_s6, 4  ;;  %s15_s7 = int_to_ptr.vmem [resolvable:$true] %s14_s7 }
   0x3   :  { %s51_s8 = scalar_lea.vmem %s15_s7, 128  ;;  %p56_p1 = scmp.lt.s32.totalorder %s15_s7, %s15_s7 }
   0x4   :  { %p52_p0 = scmp.ne.s32.totalorder %s15_s7, %s51_s8  ;;  %p57_p2 = scmp.lt.s32.totalorder %s51_s8, %s51_s8 }
   0x6   :  { %p58_p3 = por %p57_p2, %p56_p1 }
   0x8   :  { %p59_p4 = pnand %p58_p3, %p52_p0 }
   0xa   :  { %62 = shalt.err (!%p59_p4)
}
   0xb   :  { %17 = dma.hbm_to_vmem [thread:$0]  %s106_s0, 128, %s15_s7, [#allocation3]  }
   0xc   :  { %83 = dma.done.wait [#allocation3], 128  }
   0xd   :  { %84 = vsyncadd [#allocation3], 4294967168  ;;  %v21_v0 = vld [vmem:[#allocation2] sm:$0xff]  ;;  %s88_s11 = smov 1   ;;  %s89_s12 = smov [#allocation5]  }
   0xe   :  { %22 = vrot.lane.b32.xlu0 %v21_v0, %s88_s11  ;;  %s31_s13 = sshll.u32 %s89_s12, 4  ;;  %s32_s13 = int_to_ptr.vmem [resolvable:$true] %s31_s13 }
   0xf   :  { %s63_s14 = scalar_lea.vmem %s32_s13, 128  ;;  %p68_p6 = scmp.lt.s32.totalorder %s32_s13, %s32_s13 }
  0x10   :  { %p64_p5 = scmp.ne.s32.totalorder %s32_s13, %s63_s14  ;;  %p69_p7 = scmp.lt.s32.totalorder %s63_s14, %s63_s14 }
  0x12   :  { %p70_p8 = por %p69_p7, %p68_p6 }
  0x14   :  { %p71_p9 = pnand %p70_p8, %p64_p5 }
  0x80   :  { %v23_v1 = vpop.permute.xlu0 %22 }
  0x81   :  { %24 = vst [vmem:[#allocation5] sm:$0xff] %v23_v1 }
  0x82   :  { %74 = shalt.err (!%p71_p9)
}
  0x83   :  { %34 = dma.vmem_to_hbm [thread:$0]  %s32_s13, 128, %s107_s1, [#allocation4]  }
  0x84   :  { %85 = dma.done.wait [#allocation4], 128  }
  0x85   :  { %86 = vsyncadd [#allocation4], 4294967168 }
  0x86   :  { %38 = vsyncpa [#allocation3], 1 }
  0x87   :  { %39 = vsyncpa [#allocation4], 1 }

</bundles_post_ra>
